<compile_context>
chip_gen: v5e
topology: v5e:2x2
jax: 0.10.0
libtpu: 0.0.40
codegen_flags: <defaults>
</compile_context>

<pallas_src>
import jax
import jax.numpy as jnp
from jax.experimental import pallas as pl
from jax.experimental.pallas import tpu as pltpu

IMG_SHAPE = 28 * 28  # 784
HIDDEN = 32
OUT = 3
OUT_PAD = 8          # narrow output slab; wrapper slices back to 3 columns
LN_EPS = 1e-5


def _round_up(n, m):
    return ((n + m - 1) // m) * m


def classifier_kernel(x_ref, w1_ref, cs1_ref, b1_ref, w2_ref, b2_ref, o_ref):
    x = x_ref[...].astype(jnp.float32)                      # (TB, 784)

    # First matmul on raw x (MXU); LN1 applied algebraically afterwards:
    #   LN1(x) @ W  ==  (x @ W - mu * colsum(W)) * rsqrt(var + eps)
    y = jnp.dot(x, w1_ref[...], preferred_element_type=jnp.float32)   # (TB, 32)

    # Row statistics of x (single pass).
    mu = jnp.mean(x, axis=-1, keepdims=True)                # (TB, 1)
    msq = jnp.mean(x * x, axis=-1, keepdims=True)
    var = jnp.maximum(msq - mu * mu, 0.0)
    inv = jax.lax.rsqrt(var + LN_EPS)

    # LN1 folded (affine already folded into w1/b1 in the wrapper), + Sigmoid.
    h = (y - mu * cs1_ref[...]) * inv + b1_ref[...]          # (TB, 32)
    h = jax.nn.sigmoid(h)

    # LayerNorm(32) — small tensor, direct single-pass stats (affine folded
    # into w2/b2).
    mu2 = jnp.mean(h, axis=-1, keepdims=True)
    msq2 = jnp.mean(h * h, axis=-1, keepdims=True)
    var2 = jnp.maximum(msq2 - mu2 * mu2, 0.0)
    hn = (h - mu2) * jax.lax.rsqrt(var2 + LN_EPS)

    # Linear(32 -> 3, padded to 8 lanes) + Sigmoid on the narrow result only.
    out = jnp.dot(hn, w2_ref[...], preferred_element_type=jnp.float32) + b2_ref[...]
    o_ref[...] = jax.nn.sigmoid(out).astype(o_ref.dtype)


def classifier_forward(img, params, *, tb=1024):
    """img: (B, 784) float32/bfloat16 -> (B, 3) float32."""
    g1, b1, w1_t, g2, b2, w2_t = params
    B = img.shape[0]

    # --- one-time weight preprocessing (XLA, outside the kernel) -----------
    # Fold LayerNorm affine into the following linear layer:
    #   (xn*g + b) @ W  ==  xn @ (g[:,None]*W) + (b @ W)
    w1_eff = g1.reshape(IMG_SHAPE, 1) * w1_t                 # (784, 32)
    b1_eff = b1 @ w1_t                                       # (1, 32)
    cs1 = jnp.sum(w1_eff, axis=0, keepdims=True)             # (1, 32) colsum
    w2_eff = g2.reshape(HIDDEN, 1) * w2_t                    # (32, 3)
    b2_eff = b2 @ w2_t                                       # (1, 3)
    w2_pad = jnp.zeros((HIDDEN, OUT_PAD), jnp.float32).at[:, :OUT].set(w2_eff)
    b2_pad = jnp.zeros((1, OUT_PAD), jnp.float32).at[:, :OUT].set(b2_eff)

    # --- batch tiling -------------------------------------------------------
    # Big tiles to amortize per-grid-step overhead (~0.35 us), but keep >=2
    # grid steps at large B so v7x can shard the "parallel" axis across TCs.
    half = _round_up(max(1, -(-B // 2)), 8)
    TB = max(8, min(tb, half))                               # multiple of 8
    grid = (pl.cdiv(B, TB),)                                 # ragged last tile OK

    itemsize = jnp.dtype(img.dtype).itemsize
    cost = pl.CostEstimate(
        flops=2 * B * (IMG_SHAPE * HIDDEN + HIDDEN * OUT_PAD),
        transcendentals=B * (HIDDEN + OUT_PAD + 2),
        bytes_accessed=(B * IMG_SHAPE * itemsize + B * OUT_PAD * 4
                        + (IMG_SHAPE * HIDDEN + 2 * HIDDEN
                           + HIDDEN * OUT_PAD + OUT_PAD) * 4),
    )

    out = pl.pallas_call(
        classifier_kernel,
        out_shape=jax.ShapeDtypeStruct((B, OUT_PAD), jnp.float32),
        grid=grid,
        in_specs=[
            # img tile streams over the batch grid axis.
            pl.BlockSpec((TB, IMG_SHAPE), lambda i: (i, 0)),
            # weights / biases stay resident in VMEM across grid steps.
            pl.BlockSpec((IMG_SHAPE, HIDDEN), lambda i: (0, 0)),
            pl.BlockSpec((1, HIDDEN), lambda i: (0, 0)),
            pl.BlockSpec((1, HIDDEN), lambda i: (0, 0)),
            pl.BlockSpec((HIDDEN, OUT_PAD), lambda i: (0, 0)),
            pl.BlockSpec((1, OUT_PAD), lambda i: (0, 0)),
        ],
        out_specs=pl.BlockSpec((TB, OUT_PAD), lambda i: (i, 0)),
        compiler_params=pltpu.CompilerParams(
            dimension_semantics=("parallel",),
            vmem_limit_bytes=48 * 1024 * 1024),
        cost_estimate=cost,
    )(img, w1_eff, cs1, b1_eff, w2_pad, b2_pad)

    return out[:, :OUT]


def init_params(key):
    k1, k2 = jax.random.split(key)
    # LayerNorm affine params (PyTorch default init: weight=1, bias=0).
    g1 = jnp.ones((1, IMG_SHAPE), jnp.float32)
    b1 = jnp.zeros((1, IMG_SHAPE), jnp.float32)
    g2 = jnp.ones((1, HIDDEN), jnp.float32)
    b2 = jnp.zeros((1, HIDDEN), jnp.float32)
    # Linear weights in transposed (in, out) layout; uniform init a la PyTorch.
    bound1 = 1.0 / jnp.sqrt(IMG_SHAPE)
    w1_t = jax.random.uniform(k1, (IMG_SHAPE, HIDDEN), jnp.float32,
                              minval=-bound1, maxval=bound1)
    bound2 = 1.0 / jnp.sqrt(HIDDEN)
    w2_t = jax.random.uniform(k2, (HIDDEN, OUT), jnp.float32,
                              minval=-bound2, maxval=bound2)
    return (g1, b1, w1_t, g2, b2, w2_t)


def reference_forward(img, params):
    g1, b1, w1_t, g2, b2, w2_t = params
    x = img.astype(jnp.float32)
    mu = x.mean(-1, keepdims=True)
    var = ((x - mu) ** 2).mean(-1, keepdims=True)
    x = (x - mu) / jnp.sqrt(var + LN_EPS) * g1 + b1
    h = jax.nn.sigmoid(x @ w1_t)
    mu2 = h.mean(-1, keepdims=True)
    var2 = ((h - mu2) ** 2).mean(-1, keepdims=True)
    h = (h - mu2) / jnp.sqrt(var2 + LN_EPS) * g2 + b2
    return jax.nn.sigmoid(h @ w2_t)


if __name__ == "__main__":
    key = jax.random.PRNGKey(0)
    kp, kx = jax.random.split(key)
    params = init_params(kp)

    # Primary small test (single grid step).
    B = 8
    img = jax.random.normal(kx, (B, IMG_SHAPE), jnp.float32)
    out = jax.block_until_ready(classifier_forward(img, params))
    ref = reference_forward(img, params)
    assert out.shape == (B, OUT)
    assert jnp.allclose(out, ref, atol=1e-4, rtol=1e-4)

    # Ragged-batch test: B not a multiple of the tile -> 2 grid steps with an
    # out-of-bounds (masked) tail in the last block.
    B2 = 20
    img2 = jax.random.normal(jax.random.fold_in(kx, 1), (B2, IMG_SHAPE),
                             jnp.float32)
    out2 = jax.block_until_ready(classifier_forward(img2, params))
    ref2 = reference_forward(img2, params)
    assert out2.shape == (B2, OUT)
    assert jnp.allclose(out2, ref2, atol=1e-4, rtol=1e-4)

    print("KERNEL_OK")
</pallas_src>

<mosaic_0001>
module attributes {stable_mosaic.version = 11 : i64} {
  func.func @classifier_kernel(%arg0: i32, %arg1: memref<8x784xf32, #tpu.memory_space<vmem>>, %arg2: memref<784x32xf32, #tpu.memory_space<vmem>>, %arg3: memref<1x32xf32, #tpu.memory_space<vmem>>, %arg4: memref<1x32xf32, #tpu.memory_space<vmem>>, %arg5: memref<32x8xf32, #tpu.memory_space<vmem>>, %arg6: memref<1x8xf32, #tpu.memory_space<vmem>>, %arg7: memref<8x8xf32, #tpu.memory_space<vmem>>) attributes {dimension_semantics = [#tpu.dimension_semantics<parallel>], iteration_bounds = array<i64: 1>, scalar_prefetch = 0 : i64, scratch_operands = 0 : i64, tpu.core_type = #tpu.core_type<tc>, window_params = [{transform_indices = @transform_0, window_bounds = array<i64: 8, 784>}, {pipeline_mode = #tpu.pipeline_mode<synchronous>, transform_indices = @transform_1, window_bounds = array<i64: 784, 32>}, {pipeline_mode = #tpu.pipeline_mode<synchronous>, transform_indices = @transform_2, window_bounds = array<i64: 1, 32>}, {pipeline_mode = #tpu.pipeline_mode<synchronous>, transform_indices = @transform_3, window_bounds = array<i64: 1, 32>}, {pipeline_mode = #tpu.pipeline_mode<synchronous>, transform_indices = @transform_4, window_bounds = array<i64: 32, 8>}, {pipeline_mode = #tpu.pipeline_mode<synchronous>, transform_indices = @transform_5, window_bounds = array<i64: 1, 8>}, {transform_indices = @transform_6, window_bounds = array<i64: 8, 8>}]} {
    %c0 = arith.constant 0 : index
    %c0_0 = arith.constant 0 : index
    %0 = vector.load %arg1[%c0, %c0_0] : memref<8x784xf32, #tpu.memory_space<vmem>>, vector<8x784xf32>
    %c0_1 = arith.constant 0 : index
    %c0_2 = arith.constant 0 : index
    %1 = vector.load %arg2[%c0_1, %c0_2] : memref<784x32xf32, #tpu.memory_space<vmem>>, vector<784x32xf32>
    %cst = arith.constant dense<0.000000e+00> : vector<8x32xf32>
    %2 = tpu.matmul %0, %1, %cst {dimension_numbers = #tpu.dot_dimension_numbers<[1], [0], [0], [1], [0, 0, 1, 1], [], []>} : vector<8x784xf32>, vector<784x32xf32>, vector<8x32xf32> -> vector<8x32xf32>
    %cst_3 = arith.constant dense<0.000000e+00> : vector<8xf32>
    %3 = vector.multi_reduction <add>, %0, %cst_3 [1] : vector<8x784xf32> to vector<8xf32>
    %4 = vector.shape_cast %3 : vector<8xf32> to vector<8x1xf32>
    %cst_4 = arith.constant 7.840000e+02 : f32
    %5 = vector.broadcast %cst_4 : f32 to vector<8x1xf32>
    %6 = arith.divf %4, %5 : vector<8x1xf32>
    %7 = arith.mulf %0, %0 : vector<8x784xf32>
    %cst_5 = arith.constant dense<0.000000e+00> : vector<8xf32>
    %8 = vector.multi_reduction <add>, %7, %cst_5 [1] : vector<8x784xf32> to vector<8xf32>
    %9 = vector.shape_cast %8 : vector<8xf32> to vector<8x1xf32>
    %cst_6 = arith.constant 7.840000e+02 : f32
    %10 = vector.broadcast %cst_6 : f32 to vector<8x1xf32>
    %11 = arith.divf %9, %10 : vector<8x1xf32>
    %12 = arith.mulf %6, %6 : vector<8x1xf32>
    %13 = arith.subf %11, %12 : vector<8x1xf32>
    %cst_7 = arith.constant 0.000000e+00 : f32
    %14 = vector.broadcast %cst_7 : f32 to vector<8x1xf32>
    %15 = arith.maximumf %13, %14 : vector<8x1xf32>
    %cst_8 = arith.constant 9.99999974E-6 : f32
    %16 = vector.broadcast %cst_8 : f32 to vector<8x1xf32>
    %17 = arith.addf %15, %16 : vector<8x1xf32>
    %18 = math.rsqrt %17 : vector<8x1xf32>
    %c0_9 = arith.constant 0 : index
    %c0_10 = arith.constant 0 : index
    %19 = vector.load %arg3[%c0_9, %c0_10] : memref<1x32xf32, #tpu.memory_space<vmem>>, vector<1x32xf32>
    %20 = vector.broadcast %6 : vector<8x1xf32> to vector<8x32xf32>
    %21 = vector.broadcast %19 : vector<1x32xf32> to vector<8x32xf32>
    %22 = arith.mulf %20, %21 : vector<8x32xf32>
    %23 = arith.subf %2, %22 : vector<8x32xf32>
    %24 = vector.broadcast %18 : vector<8x1xf32> to vector<8x32xf32>
    %25 = arith.mulf %23, %24 : vector<8x32xf32>
    %c0_11 = arith.constant 0 : index
    %c0_12 = arith.constant 0 : index
    %26 = vector.load %arg4[%c0_11, %c0_12] : memref<1x32xf32, #tpu.memory_space<vmem>>, vector<1x32xf32>
    %27 = vector.broadcast %26 : vector<1x32xf32> to vector<8x32xf32>
    %28 = arith.addf %25, %27 : vector<8x32xf32>
    %29 = arith.negf %28 : vector<8x32xf32>
    %30 = math.exp %29 : vector<8x32xf32>
    %cst_13 = arith.constant 1.000000e+00 : f32
    %31 = vector.broadcast %cst_13 : f32 to vector<8x32xf32>
    %32 = arith.addf %31, %30 : vector<8x32xf32>
    %33 = arith.divf %31, %32 : vector<8x32xf32>
    %cst_14 = arith.constant dense<0.000000e+00> : vector<8xf32>
    %34 = vector.multi_reduction <add>, %33, %cst_14 [1] : vector<8x32xf32> to vector<8xf32>
    %35 = vector.shape_cast %34 : vector<8xf32> to vector<8x1xf32>
    %cst_15 = arith.constant 3.200000e+01 : f32
    %36 = vector.broadcast %cst_15 : f32 to vector<8x1xf32>
    %37 = arith.divf %35, %36 : vector<8x1xf32>
    %38 = arith.mulf %33, %33 : vector<8x32xf32>
    %cst_16 = arith.constant dense<0.000000e+00> : vector<8xf32>
    %39 = vector.multi_reduction <add>, %38, %cst_16 [1] : vector<8x32xf32> to vector<8xf32>
    %40 = vector.shape_cast %39 : vector<8xf32> to vector<8x1xf32>
    %cst_17 = arith.constant 3.200000e+01 : f32
    %41 = vector.broadcast %cst_17 : f32 to vector<8x1xf32>
    %42 = arith.divf %40, %41 : vector<8x1xf32>
    %43 = arith.mulf %37, %37 : vector<8x1xf32>
    %44 = arith.subf %42, %43 : vector<8x1xf32>
    %cst_18 = arith.constant 0.000000e+00 : f32
    %45 = vector.broadcast %cst_18 : f32 to vector<8x1xf32>
    %46 = arith.maximumf %44, %45 : vector<8x1xf32>
    %47 = vector.broadcast %37 : vector<8x1xf32> to vector<8x32xf32>
    %48 = arith.subf %33, %47 : vector<8x32xf32>
    %cst_19 = arith.constant 9.99999974E-6 : f32
    %49 = vector.broadcast %cst_19 : f32 to vector<8x1xf32>
    %50 = arith.addf %46, %49 : vector<8x1xf32>
    %51 = math.rsqrt %50 : vector<8x1xf32>
    %52 = vector.broadcast %51 : vector<8x1xf32> to vector<8x32xf32>
    %53 = arith.mulf %48, %52 : vector<8x32xf32>
    %c0_20 = arith.constant 0 : index
    %c0_21 = arith.constant 0 : index
    %54 = vector.load %arg5[%c0_20, %c0_21] : memref<32x8xf32, #tpu.memory_space<vmem>>, vector<32x8xf32>
    %cst_22 = arith.constant dense<0.000000e+00> : vector<8x8xf32>
    %55 = tpu.matmul %53, %54, %cst_22 {dimension_numbers = #tpu.dot_dimension_numbers<[1], [0], [0], [1], [0, 0, 1, 1], [], []>} : vector<8x32xf32>, vector<32x8xf32>, vector<8x8xf32> -> vector<8x8xf32>
    %c0_23 = arith.constant 0 : index
    %c0_24 = arith.constant 0 : index
    %56 = vector.load %arg6[%c0_23, %c0_24] : memref<1x8xf32, #tpu.memory_space<vmem>>, vector<1x8xf32>
    %57 = vector.broadcast %56 : vector<1x8xf32> to vector<8x8xf32>
    %58 = arith.addf %55, %57 : vector<8x8xf32>
    %59 = arith.negf %58 : vector<8x8xf32>
    %60 = math.exp %59 : vector<8x8xf32>
    %cst_25 = arith.constant 1.000000e+00 : f32
    %61 = vector.broadcast %cst_25 : f32 to vector<8x8xf32>
    %62 = arith.addf %61, %60 : vector<8x8xf32>
    %63 = arith.divf %61, %62 : vector<8x8xf32>
    %c0_26 = arith.constant 0 : index
    %c0_27 = arith.constant 0 : index
    %64 = vector.load %arg7[%c0_26, %c0_27] : memref<8x8xf32, #tpu.memory_space<vmem>>, vector<8x8xf32>
    tpu.vector_store %arg7[%c0_26, %c0_27], %63 {strides = array<i32>} : memref<8x8xf32, #tpu.memory_space<vmem>>, vector<8x8xf32>,
    return
  }
  func.func @transform_0(%arg0: i32) -> (i32, i32) {
    %c0_i32 = arith.constant 0 : i32
    %c0_i32_0 = arith.constant 0 : i32
    return %arg0, %c0_i32 : i32, i32
  }
  func.func @transform_1(%arg0: i32) -> (i32, i32) {
    %c0_i32 = arith.constant 0 : i32
    %c0_i32_0 = arith.constant 0 : i32
    %c0_i32_1 = arith.constant 0 : i32
    return %c0_i32, %c0_i32_0 : i32, i32
  }
  func.func @transform_2(%arg0: i32) -> (i32, i32) {
    %c0_i32 = arith.constant 0 : i32
    %c0_i32_0 = arith.constant 0 : i32
    %c0_i32_1 = arith.constant 0 : i32
    return %c0_i32, %c0_i32_0 : i32, i32
  }
  func.func @transform_3(%arg0: i32) -> (i32, i32) {
    %c0_i32 = arith.constant 0 : i32
    %c0_i32_0 = arith.constant 0 : i32
    %c0_i32_1 = arith.constant 0 : i32
    return %c0_i32, %c0_i32_0 : i32, i32
  }
  func.func @transform_4(%arg0: i32) -> (i32, i32) {
    %c0_i32 = arith.constant 0 : i32
    %c0_i32_0 = arith.constant 0 : i32
    %c0_i32_1 = arith.constant 0 : i32
    return %c0_i32, %c0_i32_0 : i32, i32
  }
  func.func @transform_5(%arg0: i32) -> (i32, i32) {
    %c0_i32 = arith.constant 0 : i32
    %c0_i32_0 = arith.constant 0 : i32
    %c0_i32_1 = arith.constant 0 : i32
    return %c0_i32, %c0_i32_0 : i32, i32
  }
  func.func @transform_6(%arg0: i32) -> (i32, i32) {
    %c0_i32 = arith.constant 0 : i32
    %c0_i32_0 = arith.constant 0 : i32
    return %arg0, %c0_i32 : i32, i32
  }
}

</mosaic_0001>

<bundles_post_ra>
// kernel: tpu_custom_call.1
= control target key start
LH: loop header
LB: loop body
LE: loop exit
PB: predicated region body
PF: predicated region fallthrough
CT: control target
= control target key end

     0   :  { %vm129_vm0 = vcmask 130048   ;;  %s930_s0 = inlined_call_operand.vmem [shape: f32[8,784], index: 0, kind: input, shape index: {}]   ;;  %s931_s1 = inlined_call_operand.vmem [shape: f32[784,32], index: 1, kind: input, shape index: {}]   ;;  %s932_s2 = inlined_call_operand.vmem [shape: f32[1,32], index: 2, kind: input, shape index: {}]   ;;  %s933_s3 = inlined_call_operand.vmem [shape: f32[1,32], index: 3, kind: input, shape index: {}]   ;;  %s934_s4 = inlined_call_operand.vmem [shape: f32[32,8], index: 4, kind: input, shape index: {}]   ;;  %s935_s5 = inlined_call_operand.vmem [shape: f32[1,8], index: 5, kind: input, shape index: {}]   ;;  %s936_s6 = inlined_call_operand.hbm [shape: f32[8,8], index: 6, kind: output, shape index: {}]  }
   0x1   :  { %v46_v0 = vld [vmem:[%s931_s1 + $0x78] sm:$0xff]  ;;  %v45_v1 = vld [vmem:[%s931_s1 + $0x70] sm:$0xff]  ;;  %v44_v4 = vld [vmem:[%s931_s1 + $0x68] sm:$0xff] }
   0x2   :  { %v62_v2 = vld [vmem:[%s931_s1 + $0xf8] sm:$0xff]  ;;  %133 = vmatpush.msra.mxu0 %v46_v0  ;;  %v61_v3 = vld [vmem:[%s931_s1 + $0xf0] sm:$0xff]  ;;  %v60_v5 = vld [vmem:[%s931_s1 + $0xe8] sm:$0xff] }
   0x3   :  { %153 = vmatpush.msra.mxu1 %v62_v2  ;;  %v43_v6 = vld [vmem:[%s931_s1 + $0x60] sm:$0xff]  ;;  %v42_v8 = vld [vmem:[%s931_s1 + $0x58] sm:$0xff]  ;;  %v77_v11 = vld [vmem:[%s931_s1 + $0x170] sm:$0xff] }
   0x4   :  { %134 = vmatpush.msra.mxu0 %v45_v1  ;;  %v59_v7 = vld [vmem:[%s931_s1 + $0xe0] sm:$0xff]  ;;  %v58_v9 = vld [vmem:[%s931_s1 + $0xd8] sm:$0xff]  ;;  %v41_v13 = vld [vmem:[%s931_s1 + $0x50] sm:$0xff] }
   0x5   :  { %154 = vmatpush.msra.mxu1 %v61_v3  ;;  %v78_v10 = vld [vmem:[%s931_s1 + $0x178] sm:$0xff]  ;;  %v57_v14 = vld [vmem:[%s931_s1 + $0xd0] sm:$0xff]  ;;  %v40_v15 = vld [vmem:[%s931_s1 + $0x48] sm:$0xff] }
   0x6   :  { %135 = vmatpush.msra.mxu0 %v44_v4  ;;  %v94_v12 = vld [vmem:[%s931_s1 + $0x1f8] sm:$0xff]  ;;  %173 = vmatpush.msra.mxu2 %v78_v10  ;;  %v76_v16 = vld [vmem:[%s931_s1 + $0x168] sm:$0xff]  ;;  %v93_v17 = vld [vmem:[%s931_s1 + $0x1f0] sm:$0xff] }
   0x7   :  { %155 = vmatpush.msra.mxu1 %v60_v5  ;;  %193 = vmatpush.msra.mxu3 %v94_v12  ;;  %v56_v18 = vld [vmem:[%s931_s1 + $0xc8] sm:$0xff]  ;;  %v606_v20 = vld [vmem:[%s930_s0] sm:$0xff]  ;;  %v619_v23 = vld [vmem:[%s930_s0 + $0x10] sm:$0xff] }
   0x8   :  { %136 = vmatpush.msra.mxu0 %v43_v6  ;;  %174 = vmatpush.msra.mxu2 %v77_v11  ;;  %v92_v19 = vld [vmem:[%s931_s1 + $0x1e8] sm:$0xff]  ;;  %v75_v21 = vld [vmem:[%s931_s1 + $0x160] sm:$0xff]  ;;  %v290_v24 = vmul.f32 %v606_v20, %v606_v20  ;;  %v292_v29 = vmul.f32 %v619_v23, %v619_v23  ;;  %v638_v30 = vld [vmem:[%s930_s0 + $0x18] sm:$0xff] }
   0x9   :  { %156 = vmatpush.msra.mxu1 %v59_v7  ;;  %194 = vmatpush.msra.mxu3 %v93_v17  ;;  %v614_v22 = vld [vmem:[%s930_s0 + $0x8] sm:$0xff]  ;;  %v39_v25 = vld [vmem:[%s931_s1 + $0x40] sm:$0xff]  ;;  %v74_v31 = vld [vmem:[%s931_s1 + $0x158] sm:$0xff]  ;;  %v293_v36 = vmul.f32 %v638_v30, %v638_v30 }
   0xa   :  { %137 = vmatpush.msra.mxu0 %v42_v8  ;;  %v55_v26 = vld [vmem:[%s931_s1 + $0xc0] sm:$0xff]  ;;  %175 = vmatpush.msra.mxu2 %v76_v16  ;;  %v273_v27 = vadd.f32 %v614_v22, %v606_v20  ;;  %v291_v28 = vmul.f32 %v614_v22, %v614_v22  ;;  %v38_v32 = vld [vmem:[%s931_s1 + $0x38] sm:$0xff]  ;;  %v73_v39 = vld [vmem:[%s931_s1 + $0x150] sm:$0xff] }
   0xb   :  { %157 = vmatpush.msra.mxu1 %v58_v9  ;;  %195 = vmatpush.msra.mxu3 %v92_v19  ;;  %v54_v33 = vld [vmem:[%s931_s1 + $0xb8] sm:$0xff]  ;;  %v91_v35 = vld [vmem:[%s931_s1 + $0x1e0] sm:$0xff]  ;;  %v37_v41 = vld [vmem:[%s931_s1 + $0x30] sm:$0xff] }
   0xc   :  { %138 = vmatpush.msra.mxu0 %v41_v13  ;;  %176 = vmatpush.msra.mxu2 %v75_v21  ;;  %v274_v34 = vadd.f32 %v273_v27, %v619_v23  ;;  %v297_v37 = vadd.f32 %v291_v28, %v290_v24  ;;  %v658_v38 = vld [vmem:[%s930_s0 + $0x20] sm:$0xff]  ;;  %v90_v40 = vld [vmem:[%s931_s1 + $0x1d8] sm:$0xff]  ;;  %v53_v42 = vld [vmem:[%s931_s1 + $0xb0] sm:$0xff] }
   0xd   :  { %158 = vmatpush.msra.mxu1 %v57_v14  ;;  %v675_v43 = vld [vmem:[%s930_s0 + $0x30] sm:$0xff]  ;;  %196 = vmatpush.msra.mxu3 %v91_v35  ;;  %v681_v46 = vld [vmem:[%s930_s0 + $0x28] sm:$0xff]  ;;  %v294_v49 = vmul.f32 %v658_v38, %v658_v38  ;;  %v71_v55 = vld [vmem:[%s931_s1 + $0x140] sm:$0xff] }
   0xe   :  { %139 = vmatpush.msra.mxu0 %v40_v15  ;;  %v275_v44 = vadd.f32 %v274_v34, %v638_v30  ;;  %177 = vmatpush.msra.mxu2 %v74_v31  ;;  %v298_v45 = vadd.f32 %v297_v37, %v292_v29  ;;  %v72_v47 = vld [vmem:[%s931_s1 + $0x148] sm:$0xff]  ;;  %v89_v48 = vld [vmem:[%s931_s1 + $0x1d0] sm:$0xff]  ;;  %v278_v54 = vsel %vm129_vm0, %v675_v43, 0.0  ;;  %v35_v57 = vld [vmem:[%s931_s1 + $0x20] sm:$0xff]  ;;  %v295_v60 = vmul.f32 %v681_v46, %v681_v46 }
   0xf   :  { %159 = vmatpush.msra.mxu1 %v56_v18  ;;  %v36_v50 = vld [vmem:[%s931_s1 + $0x28] sm:$0xff]  ;;  %197 = vmatpush.msra.mxu3 %v90_v40  ;;  %v51_v58 = vld [vmem:[%s931_s1 + $0xa0] sm:$0xff]  ;;  %v70_v62 = vld [vmem:[%s931_s1 + $0x138] sm:$0xff]  ;;  %v296_v2 = vmul.f32 %v675_v43, %v675_v43 }
  0x10   :  { %140 = vmatpush.msra.mxu0 %v39_v25  ;;  %v52_v51 = vld [vmem:[%s931_s1 + $0xa8] sm:$0xff]  ;;  %v276_v52 = vadd.f32 %v275_v44, %v658_v38  ;;  %178 = vmatpush.msra.mxu2 %v73_v39  ;;  %v299_v53 = vadd.f32 %v298_v45, %v293_v36  ;;  %v34_v63 = vld [vmem:[%s931_s1 + $0x18] sm:$0xff]  ;;  %v87_v3 = vld [vmem:[%s931_s1 + $0x1c0] sm:$0xff] }
  0x11   :  { %160 = vmatpush.msra.mxu1 %v55_v26  ;;  %v88_v56 = vld [vmem:[%s931_s1 + $0x1c8] sm:$0xff]  ;;  %198 = vmatpush.msra.mxu3 %v89_v48  ;;  %v50_v1 = vld [vmem:[%s931_s1 + $0x98] sm:$0xff]  ;;  %v69_v4 = vld [vmem:[%s931_s1 + $0x130] sm:$0xff]  ;;  %v302_v12 = vsel %vm129_vm0, %v296_v2, 0.0 }
  0x12   :  { %141 = vmatpush.msra.mxu0 %v38_v32  ;;  %v277_v59 = vadd.f32 %v276_v52, %v681_v46  ;;  %179 = vmatpush.msra.mxu2 %v72_v47  ;;  %v300_v61 = vadd.f32 %v299_v53, %v294_v49  ;;  %v33_v5 = vld [vmem:[%s931_s1 + $0x10] sm:$0xff]  ;;  %v86_v8 = vld [vmem:[%s931_s1 + $0x1b8] sm:$0xff]  ;;  %v68_v9 = vld [vmem:[%s931_s1 + $0x128] sm:$0xff] }
  0x13   :  { %161 = vmatpush.msra.mxu1 %v54_v33  ;;  %199 = vmatpush.msra.mxu3 %v88_v56  ;;  %v49_v6 = vld [vmem:[%s931_s1 + $0x90] sm:$0xff]  ;;  %v32_v10 = vld [vmem:[%s931_s1 + $0x8] sm:$0xff]  ;;  %v67_v14 = vld [vmem:[%s931_s1 + $0x120] sm:$0xff] }
  0x14   :  { %142 = vmatpush.msra.mxu0 %v37_v41  ;;  %v279_v0 = vadd.f32 %v278_v54, %v277_v59  ;;  %180 = vmatpush.msra.mxu2 %v71_v55  ;;  %v301_v7 = vadd.f32 %v300_v61, %v295_v60  ;;  %v48_v11 = vld [vmem:[%s931_s1 + $0x88] sm:$0xff]  ;;  %v85_v13 = vld [vmem:[%s931_s1 + $0x1b0] sm:$0xff]  ;;  %v31_v15 = vld [vmem:[%s931_s1] sm:$0xff] }
  0x15   :  { %162 = vmatpush.msra.mxu1 %v53_v42  ;;  %200 = vmatpush.msra.mxu3 %v87_v3  ;;  %v47_v16 = vld [vmem:[%s931_s1 + $0x80] sm:$0xff]  ;;  %v110_v17 = vld [vmem:[%s931_s1 + $0x278] sm:$0xff]  ;;  %v84_v21 = vld [vmem:[%s931_s1 + $0x1a8] sm:$0xff] }
  0x16   :  { %143 = vmatpush.msra.mxu0 %v36_v50  ;;  %280 = vadd.xlane.f32.xlu0 %v279_v0  ;;  %v126_v18 = vld [vmem:[%s931_s1 + $0x2f8] sm:$0xff]  ;;  %v303_v19 = vadd.f32 %v302_v12, %v301_v7  ;;  %v109_v24 = vld [vmem:[%s931_s1 + $0x270] sm:$0xff]  ;;  %v83_v27 = vld [vmem:[%s931_s1 + $0x1a0] sm:$0xff] }
  0x17   :  { %163 = vmatpush.msra.mxu1 %v52_v51  ;;  %181 = vmatpush.msra.mxu2 %v70_v62  ;;  %v125_v25 = vld [vmem:[%s931_s1 + $0x2f0] sm:$0xff]  ;;  %v66_v26 = vld [vmem:[%s931_s1 + $0x118] sm:$0xff]  ;;  %v108_v28 = vld [vmem:[%s931_s1 + $0x268] sm:$0xff] }
  0x18   :  { %144 = vmatpush.msra.mxu0 %v35_v57  ;;  %201 = vmatpush.msra.mxu3 %v86_v8  ;;  %v107_v29 = vld [vmem:[%s931_s1 + $0x260] sm:$0xff]  ;;  %v124_v31 = vld [vmem:[%s931_s1 + $0x2e8] sm:$0xff]  ;;  %v65_v33 = vld [vmem:[%s931_s1 + $0x110] sm:$0xff] }
  0x19   :  { %164 = vmatpush.msra.mxu1 %v51_v58  ;;  %182 = vmatpush.msra.mxu2 %v69_v4  ;;  %v123_v32 = vld [vmem:[%s931_s1 + $0x2e0] sm:$0xff]  ;;  %v82_v34 = vld [vmem:[%s931_s1 + $0x198] sm:$0xff]  ;;  %v64_v35 = vld [vmem:[%s931_s1 + $0x108] sm:$0xff] }
  0x1a   :  { %145 = vmatpush.msra.mxu0 %v34_v63  ;;  %202 = vmatpush.msra.mxu3 %v85_v13  ;;  %v81_v36 = vld [vmem:[%s931_s1 + $0x190] sm:$0xff] }
  0x1b   :  { %165 = vmatpush.msra.mxu1 %v50_v1  ;;  %183 = vmatpush.msra.mxu2 %v68_v9 }
  0x1c   :  { %146 = vmatpush.msra.mxu0 %v33_v5  ;;  %203 = vmatpush.msra.mxu3 %v84_v21 }
  0x1d   :  { %166 = vmatpush.msra.mxu1 %v49_v6  ;;  %184 = vmatpush.msra.mxu2 %v67_v14 }
  0x1e   :  { %147 = vmatpush.msra.mxu0 %v32_v10  ;;  %304 = vadd.xlane.f32.xlu0 %v303_v19 }
  0x1f   :  { %167 = vmatpush.msra.mxu1 %v48_v11  ;;  %185 = vmatpush.msra.mxu2 %v66_v26 }
  0x20   :  { %148 = vmatpush.msra.mxu0 %v31_v15  ;;  %204 = vmatpush.msra.mxu3 %v83_v27 }
  0x21   :  { %168 = vmatpush.msra.mxu1 %v47_v16 }
  0x22   :  { %213 = vmatpush.msrb.mxu0 %v110_v17 }
  0x23   :  { %233 = vmatpush.msrb.mxu1 %v126_v18 }
  0x24   :  { %214 = vmatpush.msrb.mxu0 %v109_v24 }
  0x25   :  { %234 = vmatpush.msrb.mxu1 %v125_v25 }
  0x26   :  { %215 = vmatpush.msrb.mxu0 %v108_v28 }
  0x27   :  { %235 = vmatpush.msrb.mxu1 %v124_v31 }
  0x28   :  { %11 = vsyncpa [#allocation3], 0  ;;  %v106_v37 = vld [vmem:[%s931_s1 + $0x258] sm:$0xff]  ;;  %186 = vmatpush.msra.mxu2 %v65_v33  ;;  %205 = vmatpush.msra.mxu3 %v82_v34  ;;  %v63_v40 = vld [vmem:[%s931_s1 + $0x100] sm:$0xff]  ;;  %v505_v0 = vmov 784.0   ;;  %vm352_vm8 = vcmask 261120  }
  0x29   :  { %v122_v39 = vld [vmem:[%s931_s1 + $0x2d8] sm:$0xff]  ;;  %216 = vmatpush.msrb.mxu0 %v107_v29  ;;  %236 = vmatpush.msrb.mxu1 %v123_v32  ;;  %v80_v41 = vld [vmem:[%s931_s1 + $0x188] sm:$0xff]  ;;  %v105_v42 = vld [vmem:[%s931_s1 + $0x250] sm:$0xff]  ;;  %463 = vrcp.f32 %v505_v0  ;;  %s507_s19 = smov [#allocation2]  }
  0x2a   :  { %v121_v44 = vld [vmem:[%s931_s1 + $0x2d0] sm:$0xff]  ;;  %187 = vmatpush.msra.mxu2 %v64_v35  ;;  %206 = vmatpush.msra.mxu3 %v81_v36  ;;  %v79_v45 = vld [vmem:[%s931_s1 + $0x180] sm:$0xff]  ;;  %v104_v47 = vld [vmem:[%s931_s1 + $0x248] sm:$0xff]  ;;  %s442_s20 = sshll.u32 %s507_s19, 4  ;;  %s443_s20 = int_to_ptr.vmem [resolvable:$true] %s442_s20 }
  0x2b   :  { %217 = vmatpush.msrb.mxu0 %v106_v37  ;;  %237 = vmatpush.msrb.mxu1 %v122_v39  ;;  %v120_v48 = vld [vmem:[%s931_s1 + $0x2c8] sm:$0xff]  ;;  %v103_v50 = vld [vmem:[%s931_s1 + $0x240] sm:$0xff]  ;;  %v102_v52 = vld [vmem:[%s931_s1 + $0x238] sm:$0xff] }
  0x2c   :  { %188 = vmatpush.msra.mxu2 %v63_v40  ;;  %207 = vmatpush.msra.mxu3 %v80_v41  ;;  %v128_v49 = vld [vmem:[%s931_s1 + $0x308] sm:$0xff]  ;;  %v119_v51 = vld [vmem:[%s931_s1 + $0x2c0] sm:$0xff]  ;;  %v118_v53 = vld [vmem:[%s931_s1 + $0x2b8] sm:$0xff] }
  0x2d   :  { %218 = vmatpush.msrb.mxu0 %v105_v42  ;;  %238 = vmatpush.msrb.mxu1 %v121_v44  ;;  %v101_v54 = vld [vmem:[%s931_s1 + $0x230] sm:$0xff]  ;;  %v116_v56 = vld [vmem:[%s931_s1 + $0x2a8] sm:$0xff]  ;;  %v99_v57 = vld [vmem:[%s931_s1 + $0x220] sm:$0xff] }
  0x2e   :  { %189 = vmatmul.f32.vlgmr.msra.gmra.mxu2 %v619_v23  ;;  %208 = vmatpush.msra.mxu3 %v79_v45  ;;  %v127_v23 = vld [vmem:[%s931_s1 + $0x300] sm:$0xff]  ;;  %v117_v55 = vld [vmem:[%s931_s1 + $0x2b0] sm:$0xff]  ;;  %v114_v58 = vld [vmem:[%s931_s1 + $0x298] sm:$0xff] }
  0x2f   :  { %219 = vmatpush.msrb.mxu0 %v104_v47  ;;  %239 = vmatpush.msrb.mxu1 %v120_v48  ;;  %v97_v59 = vld [vmem:[%s931_s1 + $0x210] sm:$0xff]  ;;  %v96_v60 = vld [vmem:[%s931_s1 + $0x208] sm:$0xff]  ;;  %v95_v62 = vld [vmem:[%s931_s1 + $0x200] sm:$0xff]  ;;  %v464_v1 = vpop.eup %463 }
  0x30   :  { %209 = vmatmul.f32.vlgmr.msra.gmra.mxu3 %v638_v30  ;;  %267 = vmatpush.msrb.mxu2 %v128_v49  ;;  %v100_v30 = vld [vmem:[%s931_s1 + $0x228] sm:$0xff]  ;;  %v111_v63 = vld [vmem:[%s931_s1 + $0x280] sm:$0xff]  ;;  %v283_v2 = vmul.f32 784.0, %v464_v1  ;;  %vm287_vm1 = vweird.f32 %v464_v1  ;;  %v387_v0 = vld [vmem:[%s934_s4 + $0x10] sm:$0xff] }
  0x31   :  { %220 = vmatpush.msrb.mxu0 %v103_v50  ;;  %240 = vmatpush.msrb.mxu1 %v119_v51  ;;  %v112_v61 = vld [vmem:[%s931_s1 + $0x288] sm:$0xff]  ;;  %v460_v31 = vld [vmem:[%s932_s2] ss:$0 sm:$0xff] }
  0x32   :  { %149 = vmatmul.f32.vlgmr.msra.gmra.mxu0 %v606_v20  ;;  %169 = vmatmul.f32.vlgmr.msra.gmra.mxu1 %v614_v22  ;;  %v115_v20 = vld [vmem:[%s931_s1 + $0x2a0] sm:$0xff]  ;;  %v98_v22 = vld [vmem:[%s931_s1 + $0x218] sm:$0xff]  ;;  %v284_v3 = vsub.f32 1.0, %v283_v2 }
  0x33   :  { %221 = vmatpush.msrb.mxu0 %v102_v52  ;;  %241 = vmatpush.msrb.mxu1 %v118_v53  ;;  %v461_v40 = vld [vmem:[%s933_s3] ss:$0 sm:$0xff] }
  0x34   :  { %268 = vmatpush.msrb.mxu2 %v127_v23  ;;  %v285_v4 = vmul.f32 %v464_v1, %v284_v3  ;;  %v385_v3 = vld [vmem:[%s934_s4] sm:$0xff] }
  0x35   :  { %222 = vmatpush.msrb.mxu0 %v101_v54  ;;  %242 = vmatpush.msrb.mxu1 %v117_v55 }
  0x36   :  { %453 = vmatmul.msk.f32.vlgmr.msrb.gmra.mxu2 %vm129_vm0, %v675_v43  ;;  %v113_v43 = vld [vmem:[%s931_s1 + $0x290] sm:$0xff]  ;;  %v286_v6 = vadd.f32 %v464_v1, %v285_v4 }
  0x37   :  { %223 = vmatpush.msrb.mxu0 %v100_v30  ;;  %243 = vmatpush.msrb.mxu1 %v116_v56 }
  0x38   :  { %v288_v7 = vsel %vm287_vm1, %v464_v1, %v286_v6  ;;  %v386_v1 = vld [vmem:[%s934_s4 + $0x8] sm:$0xff]  ;;  %vm435_vm1 = vcmask 64512  }
  0x39   :  { %224 = vmatpush.msrb.mxu0 %v99_v57  ;;  %244 = vmatpush.msrb.mxu1 %v115_v20 }
  0x3b   :  { %225 = vmatpush.msrb.mxu0 %v98_v22  ;;  %245 = vmatpush.msrb.mxu1 %v114_v58  ;;  %v506_v58 = vmov 32.0  }
  0x3d   :  { %226 = vmatpush.msrb.mxu0 %v97_v59  ;;  %246 = vmatpush.msrb.mxu1 %v113_v43 }
  0x3f   :  { %227 = vmatpush.msrb.mxu0 %v96_v60  ;;  %247 = vmatpush.msrb.mxu1 %v112_v61 }
  0x41   :  { %228 = vmatpush.msrb.mxu0 %v95_v62  ;;  %248 = vmatpush.msrb.mxu1 %v111_v63  ;;  %v388_v62 = vld [vmem:[%s934_s4 + $0x18] sm:$0xff] }
  0x42   :  { %229 = vmatmul.f32.vlgmr.msrb.gmra.mxu0 %v658_v38  ;;  %249 = vmatmul.f32.vlgmr.msrb.gmra.mxu1 %v681_v46 }
  0x43   :  { %408 = vmatpush.msrb.mxu3 %v388_v62 }
  0x45   :  { %409 = vmatpush.msrb.mxu3 %v387_v0 }
  0x47   :  { %410 = vmatpush.msrb.mxu3 %v386_v1 }
  0x49   :  { %411 = vmatpush.msrb.mxu3 %v385_v3 }
  0x89   :  { %v281_v5 = vpop.xlane.xlu0 %280 }
  0x8a   :  { %v289_v8 = vmul.f32 %v288_v7, %v281_v5 }
  0x8c   :  { %v307_v10 = vmul.f32 %v289_v8, %v289_v8  ;;  %v325_v36 = vmul.f32 %v460_v31, %v289_v8 }
  0x91   :  { %v305_v9 = vpop.xlane.xlu0 %304 }
  0x92   :  { %v306_v11 = vmul.f32 %v305_v9, %v288_v7 }
  0x94   :  { %v308_v12 = vsub.f32 %v306_v11, %v307_v10 }
  0x96   :  { %v309_v13 = vmax.f32 %v308_v12, 0.0 }
  0x98   :  { %v310_v14 = vadd.f32 1e-05, %v309_v13 }
  0x9a   :  { %465 = vrsqrt.f32 %v310_v14  ;;  %vm317_vm2 = vweird.f32 %v310_v14 }
  0xa0   :  { %v466_v38 = vpop.eup %465 }
  0xa1   :  { %v312_v46 = vmul.f32 %v466_v38, %v310_v14  ;;  %vm318_vm3 = vweird.f32 %v466_v38 }
  0xa2   :  { %vm319_vm4 = vmor %vm317_vm2, %vm318_vm3 }
  0xa3   :  { %v313_v18 = vmul.f32 %v466_v38, %v312_v46 }
  0xa5   :  { %v314_v24 = vmul.f32 0.5, %v313_v18 }
  0xa7   :  { %v315_v27 = vsub.f32 1.5, %v314_v24 }
  0xa9   :  { %v316_v35 = vmul.f32 %v466_v38, %v315_v27 }
  0xab   :  { %v320_v41 = vsel %vm319_vm4, %v466_v38, %v316_v35 }
  0xaf   :  { %v150_v15 = vpop.f32.mrf.mxu0  ;;  %v170_v16 = vpop.f32.mrf.mxu1 }
  0xb0   :  { %v171_v17 = vadd.f32 %v170_v16, %v150_v15 }
  0xb1   :  { %v190_v19 = vpop.f32.mrf.mxu2 }
  0xb2   :  { %v191_v21 = vadd.f32 %v190_v19, %v171_v17  ;;  %v462_v19 = vld [vmem:[%s935_s5] ss:$0 sm:$0xff]  ;;  %s444_s5 = sshll.u32 %s936_s6, 4  ;;  %s445_s5 = int_to_ptr.hbm [resolvable:$true] %s444_s5 }
  0xb3   :  { %v210_v25 = vpop.f32.mrf.mxu3 }
  0xb4   :  { %v211_v26 = vadd.f32 %v210_v25, %v191_v21 }
  0xb9   :  { %v270_v33 = vpop.f32.mrf.mxu2 }
  0xbf   :  { %v230_v28 = vpop.f32.mrf.mxu0  ;;  %v250_v29 = vpop.f32.mrf.mxu1 }
  0xc0   :  { %v231_v32 = vadd.f32 %v230_v28, %v211_v26 }
  0xc2   :  { %v251_v34 = vadd.f32 %v250_v29, %v231_v32 }
  0xc4   :  { %v271_v37 = vadd.f32 %v270_v33, %v251_v34 }
  0xc6   :  { %v326_v39 = vsub.f32 %v271_v37, %v325_v36 }
  0xc8   :  { %v327_v42 = vmul.f32 %v326_v39, %v320_v41 }
  0xca   :  { %v332_v44 = vadd.f32 %v461_v40, %v327_v42 }
  0xcc   :  { %v454_v45 = vmul.f32 -1.442695, %v332_v44 }
  0xce   :  { %467 = vpow2.f32 %v454_v45 }
  0xd4   :  { %v468_v47 = vpop.eup %467 }
  0xd5   :  { %v336_v48 = vadd.f32 1.0, %v468_v47 }
  0xd7   :  { %469 = vrcp.f32 %v336_v48  ;;  %v348_v52 = vand.u32 2147483648, %v336_v48  ;;  %v346_v23 = vand.u32 2147483647, %v336_v48  ;;  %vm342_vm6 = vweird.f32 %v336_v48 }
  0xd8   :  { %471 = vrcp.f32 %v506_v58 }
  0xd9   :  { %v349_v55 = vor.u32 1.1754944e-38, %v348_v52  ;;  %vm347_vm9 = vcmp.eq.f32.partialorder %v346_v23, 8.507059e+37 }
  0xdd   :  { %v470_v49 = vpop.eup %469 }
  0xde   :  { %v338_v50 = vmul.f32 %v470_v49, %v336_v48  ;;  %vm343_vm5 = vweird.f32 %v470_v49  ;;  %v472_v59 = vpop.eup %471 }
  0xdf   :  { %vm344_vm7 = vmor %vm342_vm6, %vm343_vm5  ;;  %v357_v43 = vmul.f32 32.0, %v472_v59  ;;  %vm361_vm10 = vweird.f32 %v472_v59 }
  0xe0   :  { %v339_v51 = vsub.f32 1.0, %v338_v50 }
  0xe1   :  { %v358_v60 = vsub.f32 1.0, %v357_v43 }
  0xe2   :  { %v340_v53 = vmul.f32 %v470_v49, %v339_v51 }
  0xe3   :  { %v359_v61 = vmul.f32 %v472_v59, %v358_v60 }
  0xe4   :  { %v341_v54 = vadd.f32 %v470_v49, %v340_v53 }
  0xe5   :  { %v360_v63 = vadd.f32 %v472_v59, %v359_v61 }
  0xe6   :  { %v345_v30 = vsel %vm344_vm7, %v470_v49, %v341_v54 }
  0xe7   :  { %v350_v56 = vsel %vm347_vm9, %v349_v55, %v345_v30  ;;  %v362_v4 = vsel %vm361_vm10, %v472_v59, %v360_v63 }
  0xe8   :  { %v353_v57 = vsel %vm352_vm8, %v350_v56, 0.0  ;;  %v364_v20 = vmul.f32 %v350_v56, %v350_v56 }
  0xe9   :  { %354 = vadd.xlane.f32.xlu1 %v353_v57 }
  0xea   :  { %v365_v22 = vsel %vm352_vm8, %v364_v20, 0.0 }
  0xf1   :  { %366 = vadd.xlane.f32.xlu1 %v365_v22 }
 0x15c   :  { %v355_v2 = vpop.xlane.xlu1 %354 }
 0x15d   :  { %v363_v5 = vmul.f32 %v362_v4, %v355_v2 }
 0x15f   :  { %v369_v7 = vmul.f32 %v363_v5, %v363_v5  ;;  %v372_v16 = vsub.f32 %v350_v56, %v363_v5 }
 0x164   :  { %v367_v6 = vpop.xlane.xlu1 %366 }
 0x165   :  { %v368_v8 = vmul.f32 %v367_v6, %v362_v4 }
 0x167   :  { %v370_v9 = vsub.f32 %v368_v8, %v369_v7 }
 0x169   :  { %v371_v10 = vmax.f32 %v370_v9, 0.0 }
 0x16b   :  { %v373_v11 = vadd.f32 1e-05, %v371_v10 }
 0x16d   :  { %473 = vrsqrt.f32 %v373_v11  ;;  %vm380_vm12 = vweird.f32 %v373_v11 }
 0x173   :  { %v474_v12 = vpop.eup %473 }
 0x174   :  { %v375_v13 = vmul.f32 %v474_v12, %v373_v11  ;;  %vm381_vm11 = vweird.f32 %v474_v12 }
 0x175   :  { %vm382_vm13 = vmor %vm380_vm12, %vm381_vm11 }
 0x176   :  { %v376_v14 = vmul.f32 %v474_v12, %v375_v13 }
 0x178   :  { %v377_v38 = vmul.f32 0.5, %v376_v14 }
 0x17a   :  { %v378_v46 = vsub.f32 1.5, %v377_v38 }
 0x17c   :  { %v379_v15 = vmul.f32 %v474_v12, %v378_v46 }
 0x17e   :  { %v383_v17 = vsel %vm382_vm13, %v474_v12, %v379_v15 }
 0x17f   :  { %v384_v18 = vmul.f32 %v383_v17, %v372_v16 }
 0x181   :  { %455 = vmatmul.msk.f32.vlgmr.msrb.gmra.mxu3 %vm352_vm8, %v384_v18 }
 0x204   :  { %v413_v21 = vpop.f32.mrf.mxu3 }
 0x205   :  { %v414_v24 = vadd.f32 %v462_v19, %v413_v21 }
 0x207   :  { %v456_v25 = vmul.f32 -1.442695, %v414_v24 }
 0x209   :  { %475 = vpow2.f32 %v456_v25 }
 0x20f   :  { %v476_v26 = vpop.eup %475 }
 0x210   :  { %v419_v27 = vadd.f32 1.0, %v476_v26 }
 0x212   :  { %477 = vrcp.f32 %v419_v27  ;;  %v431_v32 = vand.u32 2147483648, %v419_v27  ;;  %v429_v34 = vand.u32 2147483647, %v419_v27  ;;  %vm425_vm15 = vweird.f32 %v419_v27 }
 0x214   :  { %v432_v36 = vor.u32 1.1754944e-38, %v431_v32  ;;  %vm430_vm2 = vcmp.eq.f32.partialorder %v429_v34, 8.507059e+37 }
 0x218   :  { %v478_v28 = vpop.eup %477 }
 0x219   :  { %v421_v29 = vmul.f32 %v478_v28, %v419_v27  ;;  %vm426_vm14 = vweird.f32 %v478_v28 }
 0x21a   :  { %vm427_vm0 = vmor %vm425_vm15, %vm426_vm14 }
 0x21b   :  { %v422_v31 = vsub.f32 1.0, %v421_v29 }
 0x21d   :  { %v423_v33 = vmul.f32 %v478_v28, %v422_v31 }
 0x21f   :  { %v424_v35 = vadd.f32 %v478_v28, %v423_v33 }
 0x221   :  { %v428_v37 = vsel %vm427_vm0, %v478_v28, %v424_v35 }
 0x222   :  { %v433_v39 = vsel %vm430_vm2, %v432_v36, %v428_v37 }
 0x223   :  { %436 = vst.msk [vmem:[#allocation2] sm:$0xff] %vm435_vm1, %v433_v39 }
 0x224   :  { %447 = dma.vmem_to_hbm [thread:$0]  %s443_s20, 128, %s445_s5, [#allocation3]  }
 0x225   :  { %503 = dma.done.wait [#allocation3], 128  }
 0x226   :  { %504 = vsyncadd [#allocation3], 4294967168 }
 0x227   :  { %452 = vsyncpa [#allocation3], 1 }

</bundles_post_ra>
